<compile_context>
chip_gen: v6e
topology: v6e:2x2x1
jax: 0.10.0
libtpu: 0.0.40
codegen_flags: <defaults>
</compile_context>

<pallas_src>
import jax
import jax.numpy as jnp
from jax import lax
from jax.experimental import pallas as pl
from jax.experimental.pallas import tpu as pltpu


def patch_embed_kernel(x_ref, w_ref, a_ref, o_ref):
    # x_ref: (bm, K*pack)      packed token feature rows
    # w_ref: (K*pack, E*pack)  block-diagonal, BN-scaled projection matrix
    # a_ref: (bm, E*pack)      packed additive term (pos + folded bias/shift; cls row)
    # o_ref: (bm, E*pack)
    z = jnp.dot(x_ref[...], w_ref[...], preferred_element_type=jnp.float32)
    o_ref[...] = (z + a_ref[...]).astype(o_ref.dtype)


def patch_embedding(x, conv_w, conv_b, bn_gamma, bn_beta, bn_mean, bn_var,
                    cls_token, pos_embedding, patch_size=4, eps=1e-5):
    B, C, H, W = x.shape
    P = patch_size
    E = conv_w.shape[0]
    Hp, Wp = H // P, W // P
    Np = Hp * Wp
    K = C * P * P
    T = Np + 1          # tokens per batch element (cls + patches)
    rows = B * T        # total token rows

    # Lane-packing factor: pack `pack` logical tokens per 128-lane row via a pure
    # reshape + block-diagonal weight (lane-dense loads / adds / stores).
    if K == E and 128 % K == 0:
        pack = 128 // K
    else:
        pack = 1        # fallback: plain (rows, K) @ (K, E); last dims = full extent

    num_blocks = 2                                  # 2-way parallel grid (v7x megacore)
    mp_needed = -(-rows // pack)                    # packed rows needed
    block_rows = -(-mp_needed // num_blocks)
    block_rows = -(-block_rows // 8) * 8            # sublane (8) align each block
    Mp = block_rows * num_blocks                    # total packed rows (padded)
    rows_pad = Mp * pack                            # total logical rows (padded)

    # --- glue: im2col, (B, C, H, W) -> (B, Np, K), patch flattened as (C, P, P)
    patches = x.reshape(B, C, Hp, P, Wp, P)
    patches = patches.transpose(0, 2, 4, 1, 3, 5).reshape(B, Np, K)
    # Prepend a zero feature row per batch element: its matmul output is 0 and its
    # additive term carries the cls token (fuses the cls concat into the kernel).
    tok = jnp.pad(patches, ((0, 0), (1, 0), (0, 0))).reshape(rows, K)
    tok = jnp.pad(tok, ((0, rows_pad - rows), (0, 0)))
    x_packed = tok.reshape(Mp, K * pack)

    # --- fold conv bias + eval-mode BatchNorm:
    #   BN(z + b) = z * s + (b * s + shift),   s = gamma / sqrt(var + eps)
    # TODO(synk): training-mode BatchNorm (per-batch statistics) not implemented;
    #             inference running stats used.  Dropout(0.2) is identity in eval.
    scale = bn_gamma / jnp.sqrt(bn_var + eps)
    shift = bn_beta - bn_mean * scale
    t = conv_b * scale + shift                                         # (E,)
    w_scaled = conv_w.reshape(E, K).T * scale[None, :]                 # (K, E)
    w_block = jnp.kron(jnp.eye(pack, dtype=w_scaled.dtype), w_scaled)  # (K*pack, E*pack)

    add_tok = jnp.concatenate(
        [cls_token[0] + pos_embedding[0, 0:1, :],          # cls row: cls + pos[0]
         pos_embedding[0, 1:, :] + t[None, :]], axis=0)    # patch rows: pos + folded bias
    add_all = jnp.broadcast_to(add_tok[None], (B, T, E)).reshape(rows, E)
    add_all = jnp.pad(add_all, ((0, rows_pad - rows), (0, 0)))
    add_packed = add_all.reshape(Mp, E * pack)

    KP, EP = K * pack, E * pack
    cost = pl.CostEstimate(
        flops=2 * Mp * KP * EP,
        transcendentals=0,
        bytes_accessed=4 * (Mp * KP + KP * EP + 2 * Mp * EP))

    out_packed = pl.pallas_call(
        patch_embed_kernel,
        out_shape=jax.ShapeDtypeStruct((Mp, EP), x.dtype),
        grid_spec=pltpu.PrefetchScalarGridSpec(
            num_scalar_prefetch=0,
            grid=(num_blocks,),
            in_specs=[
                pl.BlockSpec((block_rows, KP), lambda i: (i, 0)),
                pl.BlockSpec((KP, EP), lambda i: (0, 0)),
                pl.BlockSpec((block_rows, EP), lambda i: (i, 0)),
            ],
            out_specs=pl.BlockSpec((block_rows, EP), lambda i: (i, 0)),
        ),
        compiler_params=pltpu.CompilerParams(
            dimension_semantics=("parallel",)),
        cost_estimate=cost,
    )(x_packed, w_block, add_packed)

    # Undo the lane packing / row padding (pure reshapes + a slice).
    out = out_packed.reshape(rows_pad, E)[:rows].reshape(B, T, E)
    return out


def reference(x, conv_w, conv_b, bn_gamma, bn_beta, bn_mean, bn_var,
              cls_token, pos_embedding, patch_size=4, eps=1e-5):
    B = x.shape[0]
    E = conv_w.shape[0]
    z = lax.conv_general_dilated(
        x, conv_w, window_strides=(patch_size, patch_size), padding="VALID",
        dimension_numbers=("NCHW", "OIHW", "NCHW"))
    z = z + conv_b[None, :, None, None]
    z = (z - bn_mean[None, :, None, None]) / jnp.sqrt(bn_var + eps)[None, :, None, None]
    z = z * bn_gamma[None, :, None, None] + bn_beta[None, :, None, None]
    Np = z.shape[2] * z.shape[3]
    z = z.reshape(B, E, Np).transpose(0, 2, 1)           # b e h w -> b (h w) e
    cls = jnp.broadcast_to(cls_token, (B, 1, E))
    out = jnp.concatenate([cls, z], axis=1) + pos_embedding
    return out


if __name__ == "__main__":
    # Module defaults: in_channels=2, patch_size=4, emb_dim=32, 28x28 images
    # (pos_embedding is hard-wired for 28 // patch_size).
    B, C, H, W = 2, 2, 28, 28
    P, E = 4, 32
    Np = (H // P) * (W // P)

    key = jax.random.PRNGKey(0)
    ks = jax.random.split(key, 9)
    x = jax.random.normal(ks[0], (B, C, H, W), jnp.float32)
    conv_w = jax.random.normal(ks[1], (E, C, P, P), jnp.float32) * 0.1
    conv_b = jax.random.normal(ks[2], (E,), jnp.float32) * 0.1
    bn_gamma = 1.0 + 0.1 * jax.random.normal(ks[3], (E,), jnp.float32)
    bn_beta = 0.1 * jax.random.normal(ks[4], (E,), jnp.float32)
    bn_mean = 0.1 * jax.random.normal(ks[5], (E,), jnp.float32)
    bn_var = 0.5 + jax.random.uniform(ks[6], (E,), jnp.float32)
    cls_token = jax.random.normal(ks[7], (1, 1, E), jnp.float32)
    pos_embedding = jax.random.normal(ks[8], (1, Np + 1, E), jnp.float32)

    fn = jax.jit(patch_embedding, static_argnames=("patch_size",))
    out = fn(x, conv_w, conv_b, bn_gamma, bn_beta, bn_mean, bn_var,
             cls_token, pos_embedding, patch_size=P)
    out = jax.block_until_ready(out)

    ref = reference(x, conv_w, conv_b, bn_gamma, bn_beta, bn_mean, bn_var,
                    cls_token, pos_embedding, patch_size=P)

    assert out.shape == (B, Np + 1, E), out.shape
    err = float(jnp.max(jnp.abs(out - ref)))
    assert jnp.allclose(out, ref, rtol=1e-4, atol=2e-4), err
    print("KERNEL_OK")
</pallas_src>

<mosaic_0001>
module attributes {stable_mosaic.version = 11 : i64} {
  func.func @patch_embed_kernel(%arg0: i32, %arg1: memref<16x128xf32, #tpu.memory_space<vmem>>, %arg2: memref<128x128xf32, #tpu.memory_space<vmem>>, %arg3: memref<16x128xf32, #tpu.memory_space<vmem>>, %arg4: memref<16x128xf32, #tpu.memory_space<vmem>>) attributes {dimension_semantics = [#tpu.dimension_semantics<parallel>], iteration_bounds = array<i64: 2>, scalar_prefetch = 0 : i64, scratch_operands = 0 : i64, tpu.core_type = #tpu.core_type<tc>, window_params = [{transform_indices = @transform_0, window_bounds = array<i64: 16, 128>}, {pipeline_mode = #tpu.pipeline_mode<synchronous>, transform_indices = @transform_1, window_bounds = array<i64: 128, 128>}, {transform_indices = @transform_2, window_bounds = array<i64: 16, 128>}, {transform_indices = @transform_3, window_bounds = array<i64: 16, 128>}]} {
    %c0 = arith.constant 0 : index
    %c0_0 = arith.constant 0 : index
    %0 = vector.load %arg1[%c0, %c0_0] : memref<16x128xf32, #tpu.memory_space<vmem>>, vector<16x128xf32>
    %c0_1 = arith.constant 0 : index
    %c0_2 = arith.constant 0 : index
    %1 = vector.load %arg2[%c0_1, %c0_2] : memref<128x128xf32, #tpu.memory_space<vmem>>, vector<128x128xf32>
    %cst = arith.constant dense<0.000000e+00> : vector<16x128xf32>
    %2 = tpu.matmul %0, %1, %cst {dimension_numbers = #tpu.dot_dimension_numbers<[1], [0], [0], [1], [0, 0, 1, 1], [], []>} : vector<16x128xf32>, vector<128x128xf32>, vector<16x128xf32> -> vector<16x128xf32>
    %c0_3 = arith.constant 0 : index
    %c0_4 = arith.constant 0 : index
    %3 = vector.load %arg3[%c0_3, %c0_4] : memref<16x128xf32, #tpu.memory_space<vmem>>, vector<16x128xf32>
    %4 = arith.addf %2, %3 : vector<16x128xf32>
    %c0_5 = arith.constant 0 : index
    %c0_6 = arith.constant 0 : index
    %5 = vector.load %arg4[%c0_5, %c0_6] : memref<16x128xf32, #tpu.memory_space<vmem>>, vector<16x128xf32>
    tpu.vector_store %arg4[%c0_5, %c0_6], %4 {strides = array<i32>} : memref<16x128xf32, #tpu.memory_space<vmem>>, vector<16x128xf32>,
    return
  }
  func.func @transform_0(%arg0: i32) -> (i32, i32) {
    %c0_i32 = arith.constant 0 : i32
    %c0_i32_0 = arith.constant 0 : i32
    return %arg0, %c0_i32 : i32, i32
  }
  func.func @transform_1(%arg0: i32) -> (i32, i32) {
    %c0_i32 = arith.constant 0 : i32
    %c0_i32_0 = arith.constant 0 : i32
    %c0_i32_1 = arith.constant 0 : i32
    return %c0_i32, %c0_i32_0 : i32, i32
  }
  func.func @transform_2(%arg0: i32) -> (i32, i32) {
    %c0_i32 = arith.constant 0 : i32
    %c0_i32_0 = arith.constant 0 : i32
    return %arg0, %c0_i32 : i32, i32
  }
  func.func @transform_3(%arg0: i32) -> (i32, i32) {
    %c0_i32 = arith.constant 0 : i32
    %c0_i32_0 = arith.constant 0 : i32
    return %arg0, %c0_i32 : i32, i32
  }
}

</mosaic_0001>

<bundles_post_ra>
// kernel: patch_embedding.1
= control target key start
LH: loop header
LB: loop body
LE: loop exit
PB: predicated region body
PF: predicated region fallthrough
CT: control target
= control target key end

     0   :  { %s463_s12 = smov 0   ;;  %s540_s0 = inlined_call_operand.vmem [shape: f32[32,128], index: 0, kind: input, shape index: {}]   ;;  %s541_s1 = inlined_call_operand.vmem [shape: f32[128,128], index: 1, kind: input, shape index: {}]   ;;  %s542_s2 = inlined_call_operand.vmem [shape: f32[32,128], index: 2, kind: input, shape index: {}]   ;;  %s543_s3 = inlined_call_operand.vmem [shape: f32[32,128], index: 3, kind: output, shape index: {}]  }
   0x1 LB: > { %s361_s13 = sadd.s32 4294967295, %s441_s12   ;;  %p365_p0 = scmp.ge.s32.totalorder %s441_s12, 1  ;;  %s441_s12 = sphi %s463_s12, %s13_s12  }
   0x2   : > { %p149_p1 = scmp.lt.s32.totalorder %s441_s12, 3 }
   0x4   : > { %p150_p2 = pnand %p365_p0, %p149_p1 }
   0x5   : > { %s366_s18 = sshll.u32 (!%p150_p2), %s361_s13, 1 }
   0x6   : > { %153 = sbr.rel (%p150_p2) target bundleno = 242 (0xf2), region = 32  ;;  %p179_p3 = scmp.lt.s32.totalorder (!%p150_p2), %s366_s18, 3 }
   0xb   : > { %v213_v0 = vld [vmem:[%s541_s1 + $0x78] sm:$0xff]  ;;  %v212_v1 = vld [vmem:[%s541_s1 + $0x70] sm:$0xff]  ;;  %v211_v2 = vld [vmem:[%s541_s1 + $0x68] sm:$0xff]  ;;  %s545_s18 = smov (!%p179_p3, %s366_s18), 3 }
   0xc   : > { %392 = vmatprep.subr.mxu0 %v213_v0  ;;  %v210_v3 = vld [vmem:[%s541_s1 + $0x60] sm:$0xff]  ;;  %s483_s23 = sshll.u32 %s545_s18, 3  ;;  %v209_v4 = vld [vmem:[%s541_s1 + $0x58] sm:$0xff]  ;;  %v208_v6 = vld [vmem:[%s541_s1 + $0x50] sm:$0xff] }
   0xd   : > { %393 = vmatpush3.msra.mxu0 %v213_v0  ;;  %s492_s28 = scalar_lea.vmem %s540_s0, %s483_s23  ;;  %v207_v7 = vld [vmem:[%s541_s1 + $0x48] sm:$0xff]  ;;  %v206_v8 = vld [vmem:[%s541_s1 + $0x40] sm:$0xff]  ;;  %v205_v9 = vld [vmem:[%s541_s1 + $0x38] sm:$0xff]  ;;  %s188_s29 = scalar_lea.vmem %s542_s2, %s483_s23 }
   0xe   : > { %394 = vmatprep.subr.mxu0 %v212_v1  ;;  %v196_v5 = vld [vmem:[%s492_s28] sm:$0xff]  ;;  %v204_v10 = vld [vmem:[%s541_s1 + $0x30] sm:$0xff]  ;;  %v203_v11 = vld [vmem:[%s541_s1 + $0x28] sm:$0xff]  ;;  %s194_s5 = scalar_lea.vmem %s543_s3, %s483_s23 }
   0xf   : > { %395 = vmatpush3.msra.mxu0 %v212_v1  ;;  %424 = vmatprep.mubr.f32.mxu0 %v196_v5  ;;  %v202_v12 = vld [vmem:[%s541_s1 + $0x20] sm:$0xff]  ;;  %v201_v13 = vld [vmem:[%s541_s1 + $0x18] sm:$0xff]  ;;  %v200_v14 = vld [vmem:[%s541_s1 + $0x10] sm:$0xff] }
  0x10   : > { %396 = vmatprep.subr.mxu0 %v211_v2  ;;  %v199_v15 = vld [vmem:[%s541_s1 + $0x8] sm:$0xff]  ;;  %v198_v16 = vld [vmem:[%s541_s1] sm:$0xff] }
  0x11   : > { %397 = vmatpush3.msra.mxu0 %v211_v2  ;;  %v197_v17 = vld [vmem:[%s492_s28 + $0x8] sm:$0xff]  ;;  %v214_v19 = vld [vmem:[%s188_s29] sm:$0xff] }
  0x12   : > { %398 = vmatprep.subr.mxu0 %v210_v3  ;;  %v215_v20 = vld [vmem:[%s188_s29 + $0x8] sm:$0xff] }
  0x13   : > { %399 = vmatpush3.msra.mxu0 %v210_v3 }
  0x14   : > { %400 = vmatprep.subr.mxu0 %v209_v4 }
  0x15   : > { %401 = vmatpush3.msra.mxu0 %v209_v4 }
  0x16   : > { %402 = vmatprep.subr.mxu0 %v208_v6 }
  0x17   : > { %403 = vmatpush3.msra.mxu0 %v208_v6 }
  0x18   : > { %404 = vmatprep.subr.mxu0 %v207_v7 }
  0x19   : > { %405 = vmatpush3.msra.mxu0 %v207_v7 }
  0x1a   : > { %406 = vmatprep.subr.mxu0 %v206_v8 }
  0x1b   : > { %407 = vmatpush3.msra.mxu0 %v206_v8 }
  0x1c   : > { %408 = vmatprep.subr.mxu0 %v205_v9 }
  0x1d   : > { %409 = vmatpush3.msra.mxu0 %v205_v9 }
  0x1e   : > { %410 = vmatprep.subr.mxu0 %v204_v10 }
  0x1f   : > { %411 = vmatpush3.msra.mxu0 %v204_v10 }
  0x20   : > { %412 = vmatprep.subr.mxu0 %v203_v11 }
  0x21   : > { %413 = vmatpush3.msra.mxu0 %v203_v11 }
  0x22   : > { %414 = vmatprep.subr.mxu0 %v202_v12 }
  0x23   : > { %415 = vmatpush3.msra.mxu0 %v202_v12 }
  0x24   : > { %416 = vmatprep.subr.mxu0 %v201_v13 }
  0x25   : > { %417 = vmatpush3.msra.mxu0 %v201_v13 }
  0x26   : > { %418 = vmatprep.subr.mxu0 %v200_v14 }
  0x27   : > { %419 = vmatpush3.msra.mxu0 %v200_v14 }
  0x28   : > { %420 = vmatprep.subr.mxu0 %v199_v15 }
  0x29   : > { %421 = vmatpush3.msra.mxu0 %v199_v15 }
  0x2a   : > { %422 = vmatprep.subr.mxu0 %v198_v16 }
  0x2b   : > { %423 = vmatpush3.msra.mxu0 %v198_v16 }
  0x2c   : > { %425 = vmatmul.mubr.f32.vlgmr.msra.gmra.mxu0 %v197_v17 }
  0xec   : > { %v426_v18 = vpop.f32.mrf.mxu0 }
  0xed   : > { %v288_v23 = vadd.f32 %v426_v18, %v215_v20 }
  0xee   : > { %v282_v21 = vpop.f32.mrf.mxu0 }
  0xef   : > { %v283_v22 = vadd.f32 %v282_v21, %v214_v19  ;;  %292 = vst [vmem:[%s194_s5 + $0x8] sm:$0xff] %v288_v23 }
  0xf1   : > { %291 = vst [vmem:[%s194_s5] sm:$0xff] %v283_v22 }
  0xf2 PF: > { %s13_s12 = sadd.s32 1, %s441_s12  }
  0xf3   : > { %p10_p4 = scmp.ge.s32.totalorder %s13_s12, 4  }
  0xf5   :  { %12 = sbr.rel (!%p10_p4) target bundleno = 1 (0x1), region = 65 }

</bundles_post_ra>
